<compile_context>
chip_gen: v7x
topology: tpu7x:2x2x1
jax: 0.10.0
libtpu: 0.0.40
codegen_flags: <defaults>
</compile_context>

<pallas_src>
import functools
import math

import jax
import jax.numpy as jnp
import numpy as np
from jax.experimental import pallas as pl
from jax.experimental.pallas import tpu as pltpu

_LANE = 128
_MAX_TILE_ROWS = 1024   # (1024, 128) f32 block = 512 KiB


def _round_up(n, m):
    return ((n + m - 1) // m) * m


# ---------------------------------------------------------------------------
# Kernel 1: step = 2 * mean(|x|) / sqrt(q_p), as a pipelined tiled reduction.
#   scale = 2 / (numel * sqrt(q_p)) is a compile-time constant;
#   acc_ref (SMEM f32 scalar scratch) persists across grid steps.
# ---------------------------------------------------------------------------
def _step_kernel(scale, x_ref, step_ref, acc_ref):
    i = pl.program_id(0)

    @pl.when(i == 0)
    def _():
        acc_ref[0] = 0.0

    # Accumulate in f32 regardless of the input dtype (bf16-safe).
    acc_ref[0] += jnp.sum(jnp.abs(x_ref[...].astype(jnp.float32)))
    # Unconditional cheap scalar write; the last grid step leaves the final
    # value step = scale * sum(|x|) in the SMEM output.
    step_ref[0, 0] = acc_ref[0] * scale


def _compute_step(x2d, numel, q_p, tile_rows):
    rows, cols = x2d.shape
    scale = 2.0 / (float(numel) * math.sqrt(float(q_p)))
    # TODO(synk): on v7x, split this reduction into two per-TensorCore partial
    # sums (parallel outer axis) to use both TCs; single-TC here for simplicity.
    return pl.pallas_call(
        functools.partial(_step_kernel, scale),
        out_shape=jax.ShapeDtypeStruct((1, 1), jnp.float32),
        grid=(rows // tile_rows,),
        in_specs=[pl.BlockSpec((tile_rows, cols), lambda i: (i, 0))],
        out_specs=pl.BlockSpec(memory_space=pltpu.MemorySpace.SMEM),
        scratch_shapes=[pltpu.SMEM((1,), jnp.float32)],
        compiler_params=pltpu.CompilerParams(
            dimension_semantics=("arbitrary",)),
    )(x2d)


# ---------------------------------------------------------------------------
# Kernel 2: the LSQ quantizer hot path (elementwise), tiled over rows.
#   s   = |step|
#   x_q = round(clamp(x * (1/s), q_n, q_p)) * s
# ---------------------------------------------------------------------------
def _lsq_quant_kernel(q_n, q_p, step_ref, x_ref, o_ref):
    s = jnp.abs(step_ref[0])              # step_abs (f32 scalar from SMEM)
    inv_s = 1.0 / s                       # once-per-tile scalar reciprocal
    xf = x_ref[...].astype(jnp.float32)   # compute in f32, store in native dtype
    x_c = jnp.clip(xf * inv_s, q_n, q_p)
    o_ref[...] = (jnp.round(x_c) * s).astype(o_ref.dtype)


def _lsq_quantize(x2d, step, q_n, q_p, tile_rows):
    rows, cols = x2d.shape
    return pl.pallas_call(
        functools.partial(_lsq_quant_kernel, float(q_n), float(q_p)),
        out_shape=jax.ShapeDtypeStruct((rows, cols), x2d.dtype),
        grid=(rows // tile_rows,),
        in_specs=[
            pl.BlockSpec(memory_space=pltpu.MemorySpace.SMEM),    # step (1,)
            pl.BlockSpec((tile_rows, cols), lambda i: (i, 0)),    # x tile
        ],
        out_specs=pl.BlockSpec((tile_rows, cols), lambda i: (i, 0)),
        compiler_params=pltpu.CompilerParams(
            dimension_semantics=("parallel",)),
    )(step, x2d)


# ---------------------------------------------------------------------------
# Wrapper mimicking LSQ.forward (training, do_init == 0): init step, then
# apply the quantizer.  Returns (x_q, step) so the "parameter" is visible.
# ---------------------------------------------------------------------------
def lsq_forward(x, q_n, q_p, step=None):
    orig_shape = x.shape
    numel = x.size

    # Sublane granularity for the native dtype (f32: 8, bf16: 16, int8: 32).
    itemsize = jnp.dtype(x.dtype).itemsize
    sublane = {4: 8, 2: 16, 1: 32}.get(itemsize, 8)

    # Lane-dense slab [rows, 128] in the native dtype; pick the largest row
    # tile (up to _MAX_TILE_ROWS) so per-grid-step overhead amortizes, and
    # only pad when rows is not already a multiple of the tile.
    rows = pl.cdiv(numel, _LANE)
    tile_rows = min(_MAX_TILE_ROWS, _round_up(rows, sublane))
    padded_rows = _round_up(rows, tile_rows)
    padded = padded_rows * _LANE

    flat = x.reshape(-1)
    if padded != numel:
        flat = jnp.pad(flat, (0, padded - numel))   # zeros don't affect sum(|x|)
    x2d = flat.reshape(padded_rows, _LANE)

    if step is None:
        # init_step: step = 2 * mean(|x|) / sqrt(q_p)
        # (padding excluded from the mean by dividing by the true numel)
        step = _compute_step(x2d, numel, q_p, tile_rows).reshape((1,))
    else:
        step = jnp.asarray(step, jnp.float32).reshape((1,))

    out2d = _lsq_quantize(x2d, step, q_n, q_p, tile_rows)
    if padded == numel:
        out = out2d.reshape(orig_shape)                       # free reshape
    else:
        out = out2d.reshape(-1)[:numel].reshape(orig_shape)   # only when padded
    return out, step


# ---------------------------------------------------------------------------
# Pure-JAX reference (mirrors the PyTorch forward exactly) for a sanity check.
# ---------------------------------------------------------------------------
def _lsq_ref(x, q_n, q_p):
    x32 = x.astype(jnp.float32)
    step = 2.0 * jnp.mean(jnp.abs(x32)) / math.sqrt(float(q_p))
    s = jnp.abs(step)
    x_q = jnp.round(jnp.clip(x32 / s, q_n, q_p)) * s
    return x_q.astype(x.dtype), step


if __name__ == "__main__":
    # nbits = 4, signed: q_n = -8, q_p = 7  (matches LSQ(nbits=4, q_n=-8, q_p=7))
    q_n, q_p = -8, 7

    key = jax.random.PRNGKey(0)
    x = jax.random.normal(key, (2, 4, 16, 16), dtype=jnp.float32)  # NCHW

    x_q, step = lsq_forward(x, q_n, q_p)
    x_q = jax.block_until_ready(x_q)
    step = jax.block_until_ready(step)

    x_q_ref, step_ref = _lsq_ref(x, q_n, q_p)
    np.testing.assert_allclose(np.asarray(step)[0], np.asarray(step_ref),
                               rtol=1e-5, atol=1e-6)
    np.testing.assert_allclose(np.asarray(x_q), np.asarray(x_q_ref),
                               rtol=1e-5, atol=1e-5)

    print("KERNEL_OK")
</pallas_src>

<mosaic_0001>
module attributes {stable_mosaic.version = 11 : i64} {
  func.func @_step_kernel(%arg0: i32, %arg1: memref<16x128xf32, #tpu.memory_space<vmem>>, %arg2: memref<1x1xf32, #tpu.memory_space<smem>>, %arg3: memref<1xf32, #tpu.memory_space<smem>>) attributes {dimension_semantics = [#tpu.dimension_semantics<arbitrary>], iteration_bounds = array<i64: 1>, scalar_prefetch = 0 : i64, scratch_operands = 1 : i64, tpu.core_type = #tpu.core_type<tc>, window_params = [{transform_indices = @transform_0, window_bounds = array<i64: 16, 128>}, {transform_indices = @transform_1, window_bounds = array<i64: 1, 1>}]} {
    %c0_i32 = arith.constant 0 : i32
    %0 = arith.cmpi eq, %arg0, %c0_i32 : i32
    %1 = arith.extui %0 : i1 to i32
    %c0_i32_0 = arith.constant 0 : i32
    %2 = arith.cmpi ne, %1, %c0_i32_0 : i32
    scf.if %2 {
      %cst_8 = arith.constant 0.000000e+00 : f32
      %c0_9 = arith.constant 0 : index
      %15 = memref.load %arg3[%c0_9] : memref<1xf32, #tpu.memory_space<smem>>
      memref.store %cst_8, %arg3[%c0_9] : memref<1xf32, #tpu.memory_space<smem>>
    } else {
    }
    %c0 = arith.constant 0 : index
    %3 = memref.load %arg3[%c0] : memref<1xf32, #tpu.memory_space<smem>>
    %c0_1 = arith.constant 0 : index
    %c0_2 = arith.constant 0 : index
    %4 = vector.load %arg1[%c0_1, %c0_2] : memref<16x128xf32, #tpu.memory_space<vmem>>, vector<16x128xf32>
    %5 = math.absf %4 : vector<16x128xf32>
    %6 = vector.shape_cast %5 : vector<16x128xf32> to vector<1x16x128xf32>
    %cst = arith.constant dense<0.000000e+00> : vector<1xf32>
    %7 = vector.multi_reduction <add>, %6, %cst [1, 2] : vector<1x16x128xf32> to vector<1xf32>
    %8 = vector.shape_cast %7 : vector<1xf32> to vector<1x1x1xf32>
    %9 = vector.extract %8[0, 0, 0] : f32 from vector<1x1x1xf32>
    %10 = arith.addf %3, %9 : f32
    %c0_3 = arith.constant 0 : index
    %11 = memref.load %arg3[%c0_3] : memref<1xf32, #tpu.memory_space<smem>>
    memref.store %10, %arg3[%c0_3] : memref<1xf32, #tpu.memory_space<smem>>
    %c0_4 = arith.constant 0 : index
    %12 = memref.load %arg3[%c0_4] : memref<1xf32, #tpu.memory_space<smem>>
    %cst_5 = arith.constant 3.69105925E-4 : f32
    %13 = arith.mulf %12, %cst_5 : f32
    %c0_6 = arith.constant 0 : index
    %c0_7 = arith.constant 0 : index
    %14 = memref.load %arg2[%c0_6, %c0_7] : memref<1x1xf32, #tpu.memory_space<smem>>
    memref.store %13, %arg2[%c0_6, %c0_7] : memref<1x1xf32, #tpu.memory_space<smem>>
    return
  }
  func.func @transform_0(%arg0: i32) -> (i32, i32) {
    %c0_i32 = arith.constant 0 : i32
    %c0_i32_0 = arith.constant 0 : i32
    return %arg0, %c0_i32 : i32, i32
  }
  func.func @transform_1(%arg0: i32) -> (i32, i32) {
    %c0_i32 = arith.constant 0 : i32
    %c0_i32_0 = arith.constant 0 : i32
    %c0_i32_1 = arith.constant 0 : i32
    return %c0_i32, %c0_i32_0 : i32, i32
  }
}

</mosaic_0001>

<bundles_post_ra>
// kernel: tpu_custom_call.1
= control target key start
LH: loop header
LB: loop body
LE: loop exit
PB: predicated region body
PF: predicated region fallthrough
CT: control target
= control target key end

     0   :  { %6 = vsyncpa [#allocation4], 0  ;;  %s145_s0 = inlined_call_operand.hbm [shape: f32[16,128], index: 0, kind: input, shape index: {}]   ;;  %s146_s1 = inlined_call_operand.hbm [shape: f32[1,1], index: 1, kind: output, shape index: {}]  }
   0x1   :  { %7 = vsyncpa [#allocation5], 0  ;;  %s107_s6 = smov [#allocation3]   ;;  %s71_s10 = scalar_lea.hbm %s145_s0, 256 }
   0x2   :  { %s13_s7 = sshll.u32 %s107_s6, 4  ;;  %p72_p0 = scmp.ne.s32.totalorder %s145_s0, %s71_s10  ;;  %s14_s7 = int_to_ptr.vmem [resolvable:$true] %s13_s7 }
   0x3   :  { %p75_p1 = scmp.lt.u32.totalorder %s71_s10, %s145_s0 }
   0x5   :  { %p77_p2 = pnand %p75_p1, %p72_p0 }
   0x7   :  { %80 = shalt.err (!%p77_p2)
}
   0x8   :  { %s81_s15 = scalar_lea.vmem %s14_s7, 256  ;;  %p86_p4 = scmp.lt.s32.totalorder %s14_s7, %s14_s7 }
   0x9   :  { %p82_p3 = scmp.ne.s32.totalorder %s14_s7, %s81_s15  ;;  %p87_p5 = scmp.lt.s32.totalorder %s81_s15, %s81_s15 }
   0xb   :  { %p88_p6 = por %p87_p5, %p86_p4 }
   0xd   :  { %p89_p7 = pnand %p88_p6, %p82_p3 }
   0xf   :  { %92 = shalt.err (!%p89_p7)
}
  0x10   :  { %s108_s16 = smov 128   ;;  %s109_s17 = smov 8  }
  0x11   :  { %19 = dma.hbm_to_vmem [thread:$0]  %s145_s0, 256, %s14_s7, [#allocation4], %s108_s16, %s108_s16, %s109_s17  }
  0x12   :  { %103 = dma.done.wait [#allocation4], 256  }
  0x13   :  { %104 = vsyncadd [#allocation4], 4294967040  ;;  %v30_v0 = vld [vmem:[#allocation3] sm:$0xff]  ;;  %v31_v1 = vld [vmem:[#allocation3 + $0x8] sm:$0xff]  ;;  %s93_s23 = scalar_lea.hbm %s146_s1, 16 }
  0x14   :  { %v32_v2 = vand.u32 2147483647, %v30_v0  ;;  %v33_v3 = vand.u32 2147483647, %v31_v1  ;;  %p94_p8 = scmp.ne.s32.totalorder %s146_s1, %s93_s23  ;;  %p97_p9 = scmp.lt.u32.totalorder %s93_s23, %s146_s1 }
  0x16   :  { %v34_v4 = vadd.f32 %v33_v3, %v32_v2  ;;  %p99_p10 = pnand %p97_p9, %p94_p8 }
  0x18   :  { %35 = vadd.xlane.f32.xlu0 %v34_v4 }
  0xa5   :  { %v36_v5 = vpop.xlane.xlu0 %35 }
  0xa6   :  { %v37_v6 = vrot.slane %v36_v5, 4 }
  0xa8   :  { %v38_v7 = vadd.f32 %v37_v6, %v36_v5 }
  0xaa   :  { %v39_v8 = vrot.slane %v38_v7, 2 }
  0xac   :  { %v40_v9 = vadd.f32 %v39_v8, %v38_v7 }
  0xae   :  { %v41_v10 = vrot.slane %v40_v9, 1 }
  0xb0   :  { %v42_v11 = vadd.f32 %v41_v10, %v40_v9 }
  0xb2   :  { %65 = vpush %v42_v11 }
  0xe3   :  { %s66_s20 = spop %65 }
  0xe4   :  { %s48_s21 = smul.f32 0.00036910592, %s66_s20 }
  0xe6   :  { %50 = sst [smem:[#allocation6]] %s48_s21 }
  0xe7   :  { %102 = shalt.err (!%p99_p10)
}
  0xe8   :  { %s110_s28 = smov [#allocation6]  }
  0xe9   :  { %58 = dma.smem_to_hbm %s110_s28, 16, %s146_s1, [#allocation5]  }
  0xea   :  { %105 = dma.done.wait [#allocation5], 16  }
  0xeb   :  { %106 = vsyncadd [#allocation5], 4294967280 }
  0xec   :  { %62 = sfence }
  0xed   :  { %63 = vsyncpa [#allocation4], 1 }
  0xee   :  { %64 = vsyncpa [#allocation5], 1 }

</bundles_post_ra>
